<compile_context>
chip_gen: v7x
topology: tpu7x:2x2x1
jax: 0.10.0
libtpu: 0.0.40
codegen_flags: <defaults>
</compile_context>

<pallas_src>
import functools

import jax
import jax.numpy as jnp
from jax.experimental import pallas as pl
from jax.experimental.pallas import tpu as pltpu

H1 = 90          # logical hidden widths (PyTorch module)
H2 = 40
H1P = 128        # lane-aligned padded widths
H2P = 128

DEFAULT_BLOCK_BATCH = 512


def _round_up(n, m):
    return ((n + m - 1) // m) * m


def _mlp_kernel(x_ref, w1_ref, b1_ref, w2_ref, b2_ref, w3_ref, b3_ref, o_ref,
                *, nonlinear):
    """Fused 3-layer MLP on one (TB, D) batch tile.

    x_ref : (TB, D)      compute dtype (f32 or bf16)
    w1_ref: (D, H1P)     compute dtype
    b1_ref: (1, H1P)     f32
    w2_ref: (H1P, H2P)   compute dtype
    b2_ref: (1, H2P)     f32
    w3_ref: (1, H2P)     f32   (layer-3 weight as a broadcast row)
    b3_ref: (1, 1)       f32
    o_ref : (TB, 1)      f32
    """
    act = jnp.tanh if nonlinear == "Tanh" else (lambda v: jnp.maximum(v, 0.0))

    x = x_ref[...]

    # Layer 1: (TB, D) @ (D, 128) -> f32 accumulation, bias + activation in f32.
    h1 = jnp.dot(x, w1_ref[...], preferred_element_type=jnp.float32) + b1_ref[...]
    h1 = act(h1)

    # Layer 2: (TB, 128) @ (128, 128) -> f32 accumulation.
    h2 = jnp.dot(h1.astype(w2_ref.dtype), w2_ref[...],
                 preferred_element_type=jnp.float32) + b2_ref[...]
    h2 = act(h2)

    # Layer 3: N=1 output -> VPU multiply + lane reduce (skip an N=1 MXU pass).
    out = jnp.sum(h2 * w3_ref[...], axis=-1, keepdims=True) + b3_ref[...]
    o_ref[...] = out.astype(o_ref.dtype)


def fully_connected_forward(x, params, *, nonlinear="ReLU",
                            compute_dtype=jnp.float32,
                            block_batch=DEFAULT_BLOCK_BATCH):
    """x: (batch, input_dim) float32 -> (batch, 1) float32.

    params: (w1, b1, w2, b2, w3_row, b3) in the padded layout produced by
    `init_params` (weights stored (in_features, out_features_padded)).
    """
    w1, b1, w2, b2, w3_row, b3 = params
    batch, d = x.shape

    # Batch tile: multiple of 8 sublanes, capped at block_batch.
    tb = min(block_batch, _round_up(batch, 8))
    batch_p = _round_up(batch, tb)
    if batch_p != batch:
        x = jnp.pad(x, ((0, batch_p - batch), (0, 0)))

    # Optional bf16 MXU path (halves HBM bytes of the x stream).
    x = x.astype(compute_dtype)
    w1c = w1.astype(compute_dtype)
    w2c = w2.astype(compute_dtype)

    grid = (batch_p // tb,)
    kernel = functools.partial(_mlp_kernel, nonlinear=nonlinear)

    out = pl.pallas_call(
        kernel,
        out_shape=jax.ShapeDtypeStruct((batch_p, 1), jnp.float32),
        grid_spec=pltpu.PrefetchScalarGridSpec(
            num_scalar_prefetch=0,
            grid=grid,
            in_specs=[
                pl.BlockSpec((tb, d), lambda i: (i, 0)),      # x tile (pipelined)
                pl.BlockSpec((d, H1P), lambda i: (0, 0)),     # w1 (resident)
                pl.BlockSpec((1, H1P), lambda i: (0, 0)),     # b1
                pl.BlockSpec((H1P, H2P), lambda i: (0, 0)),   # w2
                pl.BlockSpec((1, H2P), lambda i: (0, 0)),     # b2
                pl.BlockSpec((1, H2P), lambda i: (0, 0)),     # w3 row
                pl.BlockSpec((1, 1), lambda i: (0, 0)),       # b3
            ],
            out_specs=pl.BlockSpec((tb, 1), lambda i: (i, 0)),
        ),
        compiler_params=pltpu.CompilerParams(
            dimension_semantics=("parallel",),                # megacore on v7x
        ),
    )(x, w1c, b1, w2c, b2, w3_row, b3)

    return out[:batch]


def init_params(key, input_dim):
    """Deterministic init mirroring nn.Linear's U(-1/sqrt(fan_in), 1/sqrt(fan_in)).

    Weights are stored transposed relative to PyTorch — (in, out) — and the
    hidden dims are zero-padded to 128 lanes.  Padded bias entries are 0 and
    padded weight rows are 0, so the padded activations stay exactly 0 and
    contribute nothing downstream.
    """
    keys = jax.random.split(key, 6)

    def linear(kw, kb, fan_in, fan_out):
        bound = 1.0 / jnp.sqrt(float(fan_in))
        w = jax.random.uniform(kw, (fan_in, fan_out), jnp.float32, -bound, bound)
        b = jax.random.uniform(kb, (1, fan_out), jnp.float32, -bound, bound)
        return w, b

    w1, b1 = linear(keys[0], keys[1], input_dim, H1)          # (D, 90), (1, 90)
    w2, b2 = linear(keys[2], keys[3], H1, H2)                 # (90, 40), (1, 40)
    w3, b3 = linear(keys[4], keys[5], H2, 1)                  # (40, 1),  (1, 1)

    # Lane-pad to 128.
    w1p = jnp.pad(w1, ((0, 0), (0, H1P - H1)))                # (D, 128)
    b1p = jnp.pad(b1, ((0, 0), (0, H1P - H1)))                # (1, 128)
    w2p = jnp.pad(w2, ((0, H1P - H1), (0, H2P - H2)))         # (128, 128)
    b2p = jnp.pad(b2, ((0, 0), (0, H2P - H2)))                # (1, 128)
    w3_row = jnp.pad(w3.T, ((0, 0), (0, H2P - H2)))           # (1, 128)
    return (w1p, b1p, w2p, b2p, w3_row, b3)


def _reference_forward(x, params, nonlinear="ReLU"):
    """Pure-JAX reference on the *unpadded* slices of the padded params."""
    w1p, b1p, w2p, b2p, w3_row, b3 = params
    w1, b1 = w1p[:, :H1], b1p[:, :H1]
    w2, b2 = w2p[:H1, :H2], b2p[:, :H2]
    w3 = w3_row[:, :H2].T                                     # (40, 1)
    act = jnp.tanh if nonlinear == "Tanh" else (lambda v: jnp.maximum(v, 0.0))
    h = act(x @ w1 + b1)
    h = act(h @ w2 + b2)
    return h @ w3 + b3


if __name__ == "__main__":
    input_dim = 32   # wp_fc_input_dim

    key = jax.random.PRNGKey(0)
    k_x, k_p, k_x2 = jax.random.split(key, 3)
    params = init_params(k_p, input_dim)

    # --- small batch (the PyTorch forward flattens (B, *, D) -> (B, D)) ---
    batch = 8
    x = jax.random.normal(k_x, (batch, input_dim), dtype=jnp.float32)

    out = jax.block_until_ready(fully_connected_forward(x, params, nonlinear="ReLU"))
    ref = _reference_forward(x, params, "ReLU")
    assert out.shape == (batch, 1)
    assert jnp.allclose(out, ref, atol=1e-5, rtol=1e-5)

    # --- non-divisible batch exercising the grid + padded final tile ---
    batch2 = 600
    x2 = jax.random.normal(k_x2, (batch2, input_dim), dtype=jnp.float32)
    out2 = jax.block_until_ready(
        fully_connected_forward(x2, params, nonlinear="Tanh", block_batch=512))
    ref2 = _reference_forward(x2, params, "Tanh")
    assert out2.shape == (batch2, 1)
    assert jnp.allclose(out2, ref2, atol=1e-5, rtol=1e-5)

    # --- bf16 MXU path (f32 accumulation), looser tolerance ---
    out_bf16 = jax.block_until_ready(
        fully_connected_forward(x2, params, nonlinear="ReLU",
                                compute_dtype=jnp.bfloat16, block_batch=512))
    ref_r = _reference_forward(x2, params, "ReLU")
    assert jnp.allclose(out_bf16, ref_r, atol=3e-2, rtol=3e-2)

    print("KERNEL_OK")
</pallas_src>

<mosaic_0001>
module attributes {stable_mosaic.version = 11 : i64} {
  func.func @_mlp_kernel(%arg0: i32, %arg1: memref<8x32xf32, #tpu.memory_space<vmem>>, %arg2: memref<32x128xf32, #tpu.memory_space<vmem>>, %arg3: memref<1x128xf32, #tpu.memory_space<vmem>>, %arg4: memref<128x128xf32, #tpu.memory_space<vmem>>, %arg5: memref<1x128xf32, #tpu.memory_space<vmem>>, %arg6: memref<1x128xf32, #tpu.memory_space<vmem>>, %arg7: memref<1x1xf32, #tpu.memory_space<vmem>>, %arg8: memref<8x1xf32, #tpu.memory_space<vmem>>) attributes {dimension_semantics = [#tpu.dimension_semantics<parallel>], iteration_bounds = array<i64: 1>, scalar_prefetch = 0 : i64, scratch_operands = 0 : i64, tpu.core_type = #tpu.core_type<tc>, window_params = [{transform_indices = @transform_0, window_bounds = array<i64: 8, 32>}, {pipeline_mode = #tpu.pipeline_mode<synchronous>, transform_indices = @transform_1, window_bounds = array<i64: 32, 128>}, {pipeline_mode = #tpu.pipeline_mode<synchronous>, transform_indices = @transform_2, window_bounds = array<i64: 1, 128>}, {pipeline_mode = #tpu.pipeline_mode<synchronous>, transform_indices = @transform_3, window_bounds = array<i64: 128, 128>}, {pipeline_mode = #tpu.pipeline_mode<synchronous>, transform_indices = @transform_4, window_bounds = array<i64: 1, 128>}, {pipeline_mode = #tpu.pipeline_mode<synchronous>, transform_indices = @transform_5, window_bounds = array<i64: 1, 128>}, {pipeline_mode = #tpu.pipeline_mode<synchronous>, transform_indices = @transform_6, window_bounds = array<i64: 1, 1>}, {transform_indices = @transform_7, window_bounds = array<i64: 8, 1>}]} {
    %c0 = arith.constant 0 : index
    %c0_0 = arith.constant 0 : index
    %0 = vector.load %arg1[%c0, %c0_0] : memref<8x32xf32, #tpu.memory_space<vmem>>, vector<8x32xf32>
    %c0_1 = arith.constant 0 : index
    %c0_2 = arith.constant 0 : index
    %1 = vector.load %arg2[%c0_1, %c0_2] : memref<32x128xf32, #tpu.memory_space<vmem>>, vector<32x128xf32>
    %cst = arith.constant dense<0.000000e+00> : vector<8x128xf32>
    %2 = tpu.matmul %0, %1, %cst {dimension_numbers = #tpu.dot_dimension_numbers<[1], [0], [0], [1], [0, 0, 1, 1], [], []>} : vector<8x32xf32>, vector<32x128xf32>, vector<8x128xf32> -> vector<8x128xf32>
    %c0_3 = arith.constant 0 : index
    %c0_4 = arith.constant 0 : index
    %3 = vector.load %arg3[%c0_3, %c0_4] : memref<1x128xf32, #tpu.memory_space<vmem>>, vector<1x128xf32>
    %4 = vector.broadcast %3 : vector<1x128xf32> to vector<8x128xf32>
    %5 = arith.addf %2, %4 : vector<8x128xf32>
    %cst_5 = arith.constant 0.000000e+00 : f32
    %6 = vector.broadcast %cst_5 : f32 to vector<8x128xf32>
    %7 = arith.maximumf %5, %6 : vector<8x128xf32>
    %c0_6 = arith.constant 0 : index
    %c0_7 = arith.constant 0 : index
    %8 = vector.load %arg4[%c0_6, %c0_7] : memref<128x128xf32, #tpu.memory_space<vmem>>, vector<128x128xf32>
    %cst_8 = arith.constant dense<0.000000e+00> : vector<8x128xf32>
    %9 = tpu.matmul %7, %8, %cst_8 {dimension_numbers = #tpu.dot_dimension_numbers<[1], [0], [0], [1], [0, 0, 1, 1], [], []>} : vector<8x128xf32>, vector<128x128xf32>, vector<8x128xf32> -> vector<8x128xf32>
    %c0_9 = arith.constant 0 : index
    %c0_10 = arith.constant 0 : index
    %10 = vector.load %arg5[%c0_9, %c0_10] : memref<1x128xf32, #tpu.memory_space<vmem>>, vector<1x128xf32>
    %11 = vector.broadcast %10 : vector<1x128xf32> to vector<8x128xf32>
    %12 = arith.addf %9, %11 : vector<8x128xf32>
    %cst_11 = arith.constant 0.000000e+00 : f32
    %13 = vector.broadcast %cst_11 : f32 to vector<8x128xf32>
    %14 = arith.maximumf %12, %13 : vector<8x128xf32>
    %c0_12 = arith.constant 0 : index
    %c0_13 = arith.constant 0 : index
    %15 = vector.load %arg6[%c0_12, %c0_13] : memref<1x128xf32, #tpu.memory_space<vmem>>, vector<1x128xf32>
    %16 = vector.broadcast %15 : vector<1x128xf32> to vector<8x128xf32>
    %17 = arith.mulf %14, %16 : vector<8x128xf32>
    %cst_14 = arith.constant dense<0.000000e+00> : vector<8xf32>
    %18 = vector.multi_reduction <add>, %17, %cst_14 [1] : vector<8x128xf32> to vector<8xf32>
    %19 = vector.shape_cast %18 : vector<8xf32> to vector<8x1xf32>
    %c0_15 = arith.constant 0 : index
    %c0_16 = arith.constant 0 : index
    %20 = vector.load %arg7[%c0_15, %c0_16] : memref<1x1xf32, #tpu.memory_space<vmem>>, vector<1x1xf32>
    %21 = vector.broadcast %20 : vector<1x1xf32> to vector<8x1xf32>
    %22 = arith.addf %19, %21 : vector<8x1xf32>
    %c0_17 = arith.constant 0 : index
    %c0_18 = arith.constant 0 : index
    %23 = vector.load %arg8[%c0_17, %c0_18] : memref<8x1xf32, #tpu.memory_space<vmem>>, vector<8x1xf32>
    tpu.vector_store %arg8[%c0_17, %c0_18], %22 {strides = array<i32>} : memref<8x1xf32, #tpu.memory_space<vmem>>, vector<8x1xf32>,
    return
  }
  func.func @transform_0(%arg0: i32) -> (i32, i32) {
    %c0_i32 = arith.constant 0 : i32
    %c0_i32_0 = arith.constant 0 : i32
    return %arg0, %c0_i32 : i32, i32
  }
  func.func @transform_1(%arg0: i32) -> (i32, i32) {
    %c0_i32 = arith.constant 0 : i32
    %c0_i32_0 = arith.constant 0 : i32
    %c0_i32_1 = arith.constant 0 : i32
    return %c0_i32, %c0_i32_0 : i32, i32
  }
  func.func @transform_2(%arg0: i32) -> (i32, i32) {
    %c0_i32 = arith.constant 0 : i32
    %c0_i32_0 = arith.constant 0 : i32
    %c0_i32_1 = arith.constant 0 : i32
    return %c0_i32, %c0_i32_0 : i32, i32
  }
  func.func @transform_3(%arg0: i32) -> (i32, i32) {
    %c0_i32 = arith.constant 0 : i32
    %c0_i32_0 = arith.constant 0 : i32
    %c0_i32_1 = arith.constant 0 : i32
    return %c0_i32, %c0_i32_0 : i32, i32
  }
  func.func @transform_4(%arg0: i32) -> (i32, i32) {
    %c0_i32 = arith.constant 0 : i32
    %c0_i32_0 = arith.constant 0 : i32
    %c0_i32_1 = arith.constant 0 : i32
    return %c0_i32, %c0_i32_0 : i32, i32
  }
  func.func @transform_5(%arg0: i32) -> (i32, i32) {
    %c0_i32 = arith.constant 0 : i32
    %c0_i32_0 = arith.constant 0 : i32
    %c0_i32_1 = arith.constant 0 : i32
    return %c0_i32, %c0_i32_0 : i32, i32
  }
  func.func @transform_6(%arg0: i32) -> (i32, i32) {
    %c0_i32 = arith.constant 0 : i32
    %c0_i32_0 = arith.constant 0 : i32
    %c0_i32_1 = arith.constant 0 : i32
    return %c0_i32, %c0_i32_0 : i32, i32
  }
  func.func @transform_7(%arg0: i32) -> (i32, i32) {
    %c0_i32 = arith.constant 0 : i32
    %c0_i32_0 = arith.constant 0 : i32
    return %arg0, %c0_i32 : i32, i32
  }
}

</mosaic_0001>

<bundles_post_ra>
// kernel: tpu_custom_call.1
= control target key start
LH: loop header
LB: loop body
LE: loop exit
PB: predicated region body
PF: predicated region fallthrough
CT: control target
= control target key end

     0   :  { %s560_s0 = inlined_call_operand.hbm [shape: f32[8,32], index: 0, kind: input, shape index: {}]   ;;  %s561_s1 = inlined_call_operand.hbm [shape: f32[32,128], index: 1, kind: input, shape index: {}]   ;;  %s562_s2 = inlined_call_operand.vmem [shape: f32[1,128], index: 2, kind: input, shape index: {}]   ;;  %s563_s3 = inlined_call_operand.hbm [shape: f32[128,128], index: 3, kind: input, shape index: {}]   ;;  %s564_s4 = inlined_call_operand.vmem [shape: f32[1,128], index: 4, kind: input, shape index: {}]   ;;  %s565_s5 = inlined_call_operand.vmem [shape: f32[1,128], index: 5, kind: input, shape index: {}]   ;;  %s566_s6 = inlined_call_operand.<no memory space> [shape: f32[1,1], index: 6, kind: input, shape index: {}]   ;;  %s567_s7 = inlined_call_operand.vmem [shape: f32[8,1], index: 7, kind: output, shape index: {}]  }
   0x1   :  { %v12_v0 = vstv %s566_s6 }
   0x2   :  { %13 = vst [vmem:[#allocation2] sm:$0x1] %v12_v0 }
   0x3   :  { %14 = vsyncpa [#allocation4], 0 }
   0x4   :  { %15 = vsyncpa [#allocation6], 0  ;;  %s455_s26 = smov [#allocation5]   ;;  %s385_s30 = scalar_lea.hbm %s561_s1, 512 }
   0x5   :  { %s31_s27 = sshll.u32 %s455_s26, 4  ;;  %p386_p0 = scmp.ne.s32.totalorder %s561_s1, %s385_s30  ;;  %s32_s27 = int_to_ptr.vmem [resolvable:$true] %s31_s27 }
   0x6   :  { %p389_p1 = scmp.lt.u32.totalorder %s385_s30, %s561_s1 }
   0x8   :  { %p391_p2 = pnand %p389_p1, %p386_p0 }
   0xa   :  { %394 = shalt.err (!%p391_p2)
}
   0xb   :  { %s395_s6 = scalar_lea.vmem %s32_s27, 512  ;;  %p400_p4 = scmp.lt.s32.totalorder %s32_s27, %s32_s27 }
   0xc   :  { %p396_p3 = scmp.ne.s32.totalorder %s32_s27, %s395_s6  ;;  %p401_p5 = scmp.lt.s32.totalorder %s395_s6, %s395_s6 }
   0xe   :  { %p402_p6 = por %p401_p5, %p400_p4 }
  0x10   :  { %p403_p7 = pnand %p402_p6, %p396_p3 }
  0x12   :  { %406 = shalt.err (!%p403_p7)
}
  0x13   :  { %s456_s12 = smov 128   ;;  %s457_s13 = smov 8  }
  0x14   :  { %37 = dma.hbm_to_vmem [thread:$0]  %s561_s1, 512, %s32_s27, [#allocation6], %s456_s12, %s456_s12, %s457_s13  }
  0x15   :  { %s458_s16 = smov [#allocation3]   ;;  %s459_s18 = smov [#allocation7]  }
  0x16   :  { %s22_s17 = sshll.u32 %s458_s16, 4  ;;  %s45_s19 = sshll.u32 %s459_s18, 4  ;;  %s23_s17 = int_to_ptr.vmem [resolvable:$true] %s22_s17  ;;  %s46_s19 = int_to_ptr.vmem [resolvable:$true] %s45_s19 }
  0x17   :  { %s407_s22 = scalar_lea.hbm %s560_s0, 128 }
  0x18   :  { %p408_p8 = scmp.ne.s32.totalorder %s560_s0, %s407_s22  ;;  %p411_p9 = scmp.lt.u32.totalorder %s407_s22, %s560_s0 }
  0x1a   :  { %p413_p10 = pnand %p411_p9, %p408_p8 }
  0x1c   :  { %416 = shalt.err (!%p413_p10)
}
  0x1d   :  { %s417_s1 = scalar_lea.vmem %s23_s17, 128  ;;  %p422_p12 = scmp.lt.s32.totalorder %s23_s17, %s23_s17 }
  0x1e   :  { %p418_p11 = scmp.ne.s32.totalorder %s23_s17, %s417_s1  ;;  %p423_p13 = scmp.lt.s32.totalorder %s417_s1, %s417_s1 }
  0x20   :  { %p424_p0 = por %p423_p13, %p422_p12 }
  0x22   :  { %p425_p1 = pnand %p424_p0, %p418_p11 }
  0x24   :  { %428 = shalt.err (!%p425_p1)
}
  0x25   :  { %25 = dma.hbm_to_vmem [thread:$0]  %s560_s0, 128, %s23_s17, [#allocation4]  }
  0x26   :  { %s429_s8 = scalar_lea.hbm %s563_s3, 2048 }
  0x27   :  { %p430_p2 = scmp.ne.s32.totalorder %s563_s3, %s429_s8  ;;  %p433_p3 = scmp.lt.u32.totalorder %s429_s8, %s563_s3 }
  0x29   :  { %p435_p4 = pnand %p433_p3, %p430_p2 }
  0x2b   :  { %438 = shalt.err (!%p435_p4)
}
  0x2c   :  { %s439_s14 = scalar_lea.vmem %s46_s19, 2048  ;;  %p444_p6 = scmp.lt.s32.totalorder %s46_s19, %s46_s19 }
  0x2d   :  { %p440_p5 = scmp.ne.s32.totalorder %s46_s19, %s439_s14  ;;  %p445_p7 = scmp.lt.s32.totalorder %s439_s14, %s439_s14 }
  0x2f   :  { %p446_p8 = por %p445_p7, %p444_p6 }
  0x31   :  { %p447_p9 = pnand %p446_p8, %p440_p5 }
  0x33   :  { %450 = shalt.err (!%p447_p9)
}
  0x34   :  { %51 = dma.hbm_to_vmem [thread:$0]  %s563_s3, 2048, %s46_s19, [#allocation6], %s456_s12, %s456_s12, %s457_s13  }
  0x35   :  { %451 = dma.done.wait [#allocation4], 128  }
  0x36   :  { %452 = vsyncadd [#allocation4], 4294967168 }
  0x37   :  { %453 = dma.done.wait [#allocation6], 2560  }
  0x38   :  { %454 = vsyncadd [#allocation6], 4294964736  ;;  %v460_v1 = vmov 0.0|0.0   ;;  %vm461_vm0 = vmmov 0   ;;  %v462_v2 = vmov 0.0   ;;  %v68_v3 = vld [vmem:[#allocation5] sm:$0xff] }
  0x39   :  { %347 = vmatprep.subr.bf16.mxu0 %v460_v1  ;;  %309 = vmatprep.mubr.msk.f32.mxu0 %vm461_vm0, %v462_v2  ;;  %v69_v4 = vld [vmem:[#allocation5 + $0x8] sm:$0xff]  ;;  %v70_v5 = vld [vmem:[#allocation5 + $0x10] sm:$0xff]  ;;  %v71_v7 = vld [vmem:[#allocation5 + $0x18] sm:$0xff]  ;;  %vm79_vm1 = vcmask 261120   ;;  %vm266_vm2 = vcmask 7168  }
  0x3a   :  { %353 = vmatprep.subr.bf16.mxu1 %v460_v1  ;;  %344 = vmatprep.mubr.msk.f32.mxu1 %vm461_vm0, %v462_v2  ;;  %v348_v6 = vpack.c.bf16 %v69_v4, %v68_v3  ;;  %v154_v8 = vld [vmem:[#allocation7] sm:$0xff]  ;;  %v155_v9 = vld [vmem:[#allocation7 + $0x8] sm:$0xff]  ;;  %v156_v10 = vld [vmem:[#allocation7 + $0x10] sm:$0xff]  ;;  %v351_v12 = vpack.c.bf16 %v71_v7, %v70_v5 }
  0x3b   :  { %v157_v11 = vld [vmem:[#allocation7 + $0x18] sm:$0xff]  ;;  %v354_v13 = vpack.c.bf16 %v155_v9, %v154_v8  ;;  %v158_v15 = vld [vmem:[#allocation7 + $0x20] sm:$0xff]  ;;  %v159_v16 = vld [vmem:[#allocation7 + $0x28] sm:$0xff] }
  0x3c   :  { %349 = vmatpush3.bf16.msra.mxu0 %v348_v6  ;;  %v357_v14 = vpack.c.bf16 %v157_v11, %v156_v10  ;;  %v67_v17 = vld [vmem:[#allocation3] sm:$0xff]  ;;  %v360_v18 = vpack.c.bf16 %v159_v16, %v158_v15  ;;  %v160_v19 = vld [vmem:[#allocation7 + $0x30] sm:$0xff]  ;;  %v162_v22 = vld [vmem:[#allocation7 + $0x40] sm:$0xff] }
  0x3d   :  { %350 = vmatprep.subr.bf16.mxu0 %v460_v1  ;;  %355 = vmatpush3.bf16.msra.mxu1 %v354_v13  ;;  %v161_v20 = vld [vmem:[#allocation7 + $0x38] sm:$0xff]  ;;  %v163_v23 = vld [vmem:[#allocation7 + $0x48] sm:$0xff]  ;;  %v164_v25 = vld [vmem:[#allocation7 + $0x50] sm:$0xff] }
  0x3e   :  { %356 = vmatprep.subr.bf16.mxu1 %v460_v1  ;;  %v363_v21 = vpack.c.bf16 %v161_v20, %v160_v19  ;;  %v366_v24 = vpack.c.bf16 %v163_v23, %v162_v22  ;;  %v165_v26 = vld [vmem:[#allocation7 + $0x58] sm:$0xff]  ;;  %v166_v28 = vld [vmem:[#allocation7 + $0x60] sm:$0xff]  ;;  %v167_v29 = vld [vmem:[#allocation7 + $0x68] sm:$0xff] }
  0x3f   :  { %v369_v27 = vpack.c.bf16 %v165_v26, %v164_v25  ;;  %v372_v30 = vpack.c.bf16 %v167_v29, %v166_v28  ;;  %v168_v31 = vld [vmem:[#allocation7 + $0x70] sm:$0xff]  ;;  %v169_v32 = vld [vmem:[#allocation7 + $0x78] sm:$0xff] }
  0x40   :  { %352 = vmatpush3.bf16.msra.mxu0 %v351_v12  ;;  %v375_v33 = vpack.c.bf16 %v169_v32, %v168_v31  ;;  %v274_v34 = vld [vmem:[%s562_s2] ss:$0 sm:$0xff] }
  0x41   :  { %358 = vmatpush3.bf16.msra.mxu1 %v357_v14  ;;  %v276_v39 = vld [vmem:[%s564_s4] ss:$0 sm:$0xff] }
  0x42   :  { %359 = vmatprep.subr.bf16.mxu1 %v460_v1  ;;  %v277_v43 = vld [vmem:[%s565_s5] ss:$0 sm:$0xff] }
  0x43   :  { %310 = vmatmul.mubr.msk.f32.vlgmr.msra.gmra.mrb[0].mxu0 %vm79_vm1, %v67_v17  ;;  %v278_v46 = vld [vmem:[#allocation2] ss:$0 sm:$0xff] }
  0x45   :  { %361 = vmatpush3.bf16.msra.mxu1 %v360_v18 }
  0x46   :  { %362 = vmatprep.subr.bf16.mxu1 %v460_v1 }
  0x49   :  { %364 = vmatpush3.bf16.msra.mxu1 %v363_v21 }
  0x4a   :  { %365 = vmatprep.subr.bf16.mxu1 %v460_v1 }
  0x4d   :  { %367 = vmatpush3.bf16.msra.mxu1 %v366_v24 }
  0x4e   :  { %368 = vmatprep.subr.bf16.mxu1 %v460_v1 }
  0x51   :  { %370 = vmatpush3.bf16.msra.mxu1 %v369_v27 }
  0x52   :  { %371 = vmatprep.subr.bf16.mxu1 %v460_v1 }
  0x55   :  { %373 = vmatpush3.bf16.msra.mxu1 %v372_v30 }
  0x56   :  { %374 = vmatprep.subr.bf16.mxu1 %v460_v1 }
  0x59   :  { %376 = vmatpush3.bf16.msra.mxu1 %v375_v33 }
 0x116   :  { %v149_v35 = vpop.f32.mrb[0].mxu0 }
 0x117   :  { %v150_v36 = vadd.f32 %v274_v34, %v149_v35  ;;  %v311_v37 = vpop.f32.mrb[1].mxu0 }
 0x119   :  { %v153_v38 = vmax.f32 %v150_v36, 0.0 }
 0x11b   :  { %345 = vmatmul.mubr.f32.vlgmr.msra.gmra.mrb[0].mxu1 %v153_v38 }
 0x1ee   :  { %v243_v40 = vpop.f32.mrb[0].mxu1 }
 0x1ef   :  { %v244_v41 = vadd.f32 %v276_v39, %v243_v40  ;;  %v346_v42 = vpop.f32.mrb[1].mxu1 }
 0x1f1   :  { %v247_v44 = vmax.f32 %v244_v41, 0.0 }
 0x1f3   :  { %v255_v45 = vmul.f32 %v277_v43, %v247_v44 }
 0x1f5   :  { %256 = vadd.xlane.f32.xlu0 %v255_v45 }
 0x282   :  { %v257_v47 = vpop.xlane.xlu0 %256 }
 0x283   :  { %v265_v48 = vadd.f32 %v278_v46, %v257_v47 }
 0x285   :  { %267 = vst.msk [vmem:[%s567_s7] sm:$0xff] %vm266_vm2, %v265_v48 }
 0x286   :  { %272 = vsyncpa [#allocation4], 1 }
 0x287   :  { %273 = vsyncpa [#allocation6], 1 }

</bundles_post_ra>
